<compile_context>
chip_gen: v6e
topology: v6e:2x2x1
jax: 0.10.0
libtpu: 0.0.40
codegen_flags: <defaults>
</compile_context>

<pallas_src>
import functools

import jax
import jax.numpy as jnp
from jax.experimental import pallas as pl
from jax.experimental.pallas import tpu as pltpu

PAIRWISE_EPS = 1e-6  # torch F.pairwise_distance default eps (added to the diff)


def _contrastive_loss_kernel(margin_ref, o1_ref, o2_ref, lbl_ref, out_ref,
                             acc_ref, *, true_b, block_b):
    i = pl.program_id(0)

    @pl.when(i == 0)
    def _init():
        acc_ref[...] = jnp.zeros_like(acc_ref)

    # Cast the (possibly low-precision) tile to f32 inside VMEM; HBM traffic
    # stays in the native input dtype.
    o1 = o1_ref[...].astype(jnp.float32)                       # (TB, D)
    o2 = o2_ref[...].astype(jnp.float32)                       # (TB, D)
    lbl = lbl_ref[...].astype(jnp.float32)                     # (TB, 1)

    diff = o1 - o2 + PAIRWISE_EPS                              # torch eps semantics
    sq_sum = jnp.sum(diff * diff, axis=-1, keepdims=True)      # (TB, 1) == dist^2
    dist = jnp.sqrt(sq_sum)                                    # euclidean distance

    margin = margin_ref[0]                                     # SMEM scalar
    hinge = jnp.maximum(margin - dist, 0.0)
    # Use sq_sum directly for the similar-pair term (avoids sqrt->square trip).
    per_sample = (1.0 - lbl) * sq_sum + lbl * (hinge * hinge)  # (TB, 1)

    if true_b % block_b != 0:
        # Last tile is partial: mask rows past the real batch out of the sum.
        row = jax.lax.broadcasted_iota(jnp.int32, per_sample.shape, 0) + i * block_b
        per_sample = jnp.where(row < true_b, per_sample, 0.0)

    acc_ref[...] += jnp.sum(per_sample, keepdims=True)         # (1, 1) partial sum

    @pl.when(i == pl.num_programs(0) - 1)
    def _finalize():
        out_ref[...] = acc_ref[...] * (1.0 / float(true_b))


def _choose_block_b(batch, feat_dim, itemsize):
    """Largest sublane-aligned row tile whose VMEM working set fits the budget."""
    # Working set per row of tile:
    #   * 2 inputs x 2 pipeline buffers in native dtype
    #   * ~4 f32 elementwise intermediates (o1_f32, o2_f32, diff, diff^2)
    budget = 24 * 1024 * 1024                 # leaves headroom under the 32 MiB limit
    bytes_per_row = 2 * 2 * feat_dim * itemsize + 4 * feat_dim * 4
    tb = budget // max(bytes_per_row, 1)
    tb = min(tb, 1024)                        # diminishing returns past ~512-1024 rows
    tb = max(8, (tb // 8) * 8)                # sublane alignment
    if batch <= tb:
        return batch                          # single full-batch block (always legal)
    return tb


def contrastive_loss(output1, output2, label, margin=3.0, block_b=None):
    assert output1.ndim == 2 and output1.shape == output2.shape
    B, D = output1.shape
    lbl = jnp.asarray(label).reshape(B, 1)
    margin_arr = jnp.asarray([margin], dtype=jnp.float32)

    if block_b is None:
        block_b = _choose_block_b(B, D, jnp.dtype(output1.dtype).itemsize)
    grid = (pl.cdiv(B, block_b),)

    kernel = functools.partial(_contrastive_loss_kernel, true_b=B, block_b=block_b)

    out = pl.pallas_call(
        kernel,
        out_shape=jax.ShapeDtypeStruct((1, 1), jnp.float32),
        grid=grid,
        in_specs=[
            pl.BlockSpec(memory_space=pltpu.MemorySpace.SMEM),   # margin scalar
            pl.BlockSpec((block_b, D), lambda i: (i, 0)),        # output1 tile
            pl.BlockSpec((block_b, D), lambda i: (i, 0)),        # output2 tile
            pl.BlockSpec((block_b, 1), lambda i: (i, 0)),        # label tile
        ],
        out_specs=pl.BlockSpec((1, 1), lambda i: (0, 0)),        # resident scalar
        scratch_shapes=[pltpu.VMEM((1, 1), jnp.float32)],        # running sum
        compiler_params=pltpu.CompilerParams(
            dimension_semantics=("arbitrary",),                  # reduction axis
            vmem_limit_bytes=32 * 1024 * 1024,
        ),
    )(margin_arr, output1, output2, lbl)
    return out[0, 0]


def _reference_loss(o1, o2, label, margin=3.0):
    diff = o1.astype(jnp.float32) - o2.astype(jnp.float32) + PAIRWISE_EPS
    dist = jnp.sqrt(jnp.sum(diff * diff, axis=-1))
    hinge = jnp.maximum(margin - dist, 0.0)
    return jnp.mean((1.0 - jnp.asarray(label, jnp.float32)) * dist**2
                    + jnp.asarray(label, jnp.float32) * hinge**2)


if __name__ == "__main__":
    key = jax.random.PRNGKey(0)
    k1, k2, k3 = jax.random.split(key, 3)

    # B deliberately NOT a multiple of the 8-row tile to exercise masking.
    B, D = 12, 32
    output1 = jax.random.normal(k1, (B, D), dtype=jnp.float32)
    output2 = jax.random.normal(k2, (B, D), dtype=jnp.float32)
    label = jax.random.bernoulli(k3, 0.5, (B,)).astype(jnp.float32)

    ref = _reference_loss(output1, output2, label)

    # Multi-tile path: grid=(2,), 8-row tiles, partial last tile masked.
    loss_tiled = jax.block_until_ready(
        contrastive_loss(output1, output2, label, block_b=8))
    assert jnp.allclose(loss_tiled, ref, rtol=1e-5, atol=1e-5), (loss_tiled, ref)

    # Auto tile-size path: single full-batch block.
    loss_auto = jax.block_until_ready(contrastive_loss(output1, output2, label))
    assert jnp.allclose(loss_auto, ref, rtol=1e-5, atol=1e-5), (loss_auto, ref)

    # Low-precision inputs: native bf16 HBM traffic, f32 math inside the kernel.
    o1_bf = output1.astype(jnp.bfloat16)
    o2_bf = output2.astype(jnp.bfloat16)
    loss_bf16 = jax.block_until_ready(contrastive_loss(o1_bf, o2_bf, label, block_b=8))
    ref_bf16 = _reference_loss(o1_bf, o2_bf, label)
    assert jnp.allclose(loss_bf16, ref_bf16, rtol=1e-4, atol=1e-4), (loss_bf16, ref_bf16)

    print("KERNEL_OK")
</pallas_src>

<mosaic_0001>
module attributes {stable_mosaic.version = 11 : i64} {
  func.func @_contrastive_loss_kernel(%arg0: i32, %arg1: memref<1xf32, #tpu.memory_space<smem>>, %arg2: memref<8x32xf32, #tpu.memory_space<vmem>>, %arg3: memref<8x32xf32, #tpu.memory_space<vmem>>, %arg4: memref<8x1xf32, #tpu.memory_space<vmem>>, %arg5: memref<1x1xf32, #tpu.memory_space<vmem>>, %arg6: memref<1x1xf32, #tpu.memory_space<vmem>>) attributes {dimension_semantics = [#tpu.dimension_semantics<arbitrary>], iteration_bounds = array<i64: 2>, scalar_prefetch = 0 : i64, scratch_operands = 1 : i64, tpu.core_type = #tpu.core_type<tc>, window_params = [{transform_indices = @transform_0, window_bounds = array<i64: 1>}, {transform_indices = @transform_1, window_bounds = array<i64: 8, 32>}, {transform_indices = @transform_2, window_bounds = array<i64: 8, 32>}, {transform_indices = @transform_3, window_bounds = array<i64: 8, 1>}, {pipeline_mode = #tpu.pipeline_mode<synchronous>, transform_indices = @transform_4, window_bounds = array<i64: 1, 1>}]} {
    %c0_i32 = arith.constant 0 : i32
    %0 = arith.cmpi eq, %arg0, %c0_i32 : i32
    %1 = arith.extui %0 : i1 to i32
    %c0_i32_0 = arith.constant 0 : i32
    %2 = arith.cmpi ne, %1, %c0_i32_0 : i32
    scf.if %2 {
      %cst_17 = arith.constant 0.000000e+00 : f32
      %43 = vector.broadcast %cst_17 : f32 to vector<1x1xf32>
      %c0_18 = arith.constant 0 : index
      %c0_19 = arith.constant 0 : index
      %44 = vector.load %arg6[%c0_18, %c0_19] : memref<1x1xf32, #tpu.memory_space<vmem>>, vector<1x1xf32>
      tpu.vector_store %arg6[%c0_18, %c0_19], %43 {strides = array<i32>} : memref<1x1xf32, #tpu.memory_space<vmem>>, vector<1x1xf32>,
    } else {
    }
    %c0 = arith.constant 0 : index
    %c0_1 = arith.constant 0 : index
    %3 = vector.load %arg2[%c0, %c0_1] : memref<8x32xf32, #tpu.memory_space<vmem>>, vector<8x32xf32>
    %c0_2 = arith.constant 0 : index
    %c0_3 = arith.constant 0 : index
    %4 = vector.load %arg3[%c0_2, %c0_3] : memref<8x32xf32, #tpu.memory_space<vmem>>, vector<8x32xf32>
    %c0_4 = arith.constant 0 : index
    %c0_5 = arith.constant 0 : index
    %5 = vector.load %arg4[%c0_4, %c0_5] : memref<8x1xf32, #tpu.memory_space<vmem>>, vector<8x1xf32>
    %6 = arith.subf %3, %4 : vector<8x32xf32>
    %cst = arith.constant 9.99999997E-7 : f32
    %7 = vector.broadcast %cst : f32 to vector<8x32xf32>
    %8 = arith.addf %6, %7 : vector<8x32xf32>
    %9 = arith.mulf %8, %8 : vector<8x32xf32>
    %cst_6 = arith.constant dense<0.000000e+00> : vector<8xf32>
    %10 = vector.multi_reduction <add>, %9, %cst_6 [1] : vector<8x32xf32> to vector<8xf32>
    %11 = vector.shape_cast %10 : vector<8xf32> to vector<8x1xf32>
    %12 = math.sqrt %11 : vector<8x1xf32>
    %c0_7 = arith.constant 0 : index
    %13 = memref.load %arg1[%c0_7] : memref<1xf32, #tpu.memory_space<smem>>
    %14 = vector.broadcast %13 : f32 to vector<8x1xf32>
    %15 = arith.subf %14, %12 : vector<8x1xf32>
    %cst_8 = arith.constant 0.000000e+00 : f32
    %16 = vector.broadcast %cst_8 : f32 to vector<8x1xf32>
    %17 = arith.maximumf %15, %16 : vector<8x1xf32>
    %cst_9 = arith.constant 1.000000e+00 : f32
    %18 = vector.broadcast %cst_9 : f32 to vector<8x1xf32>
    %19 = arith.subf %18, %5 : vector<8x1xf32>
    %20 = arith.mulf %19, %11 : vector<8x1xf32>
    %21 = arith.mulf %17, %17 : vector<8x1xf32>
    %22 = arith.mulf %5, %21 : vector<8x1xf32>
    %23 = arith.addf %20, %22 : vector<8x1xf32>
    %24 = tpu.iota {dimensions = array<i32: 0>} : vector<8x1xi32>
    %c8_i32 = arith.constant 8 : i32
    %25 = arith.muli %arg0, %c8_i32 : i32
    %26 = vector.broadcast %25 : i32 to vector<8x1xi32>
    %27 = arith.addi %24, %26 : vector<8x1xi32>
    %c12_i32 = arith.constant 12 : i32
    %28 = vector.broadcast %c12_i32 : i32 to vector<8x1xi32>
    %29 = arith.cmpi slt, %27, %28 : vector<8x1xi32>
    %cst_10 = arith.constant 0.000000e+00 : f32
    %30 = vector.broadcast %cst_10 : f32 to vector<8x1xf32>
    %31 = arith.select %29, %23, %30 : vector<8x1xi1>, vector<8x1xf32>
    %c0_11 = arith.constant 0 : index
    %c0_12 = arith.constant 0 : index
    %32 = vector.load %arg6[%c0_11, %c0_12] : memref<1x1xf32, #tpu.memory_space<vmem>>, vector<1x1xf32>
    %33 = vector.shape_cast %31 : vector<8x1xf32> to vector<1x8x1xf32>
    %cst_13 = arith.constant dense<0.000000e+00> : vector<1xf32>
    %34 = vector.multi_reduction <add>, %33, %cst_13 [1, 2] : vector<1x8x1xf32> to vector<1xf32>
    %35 = vector.shape_cast %34 : vector<1xf32> to vector<1x1x1xf32>
    %36 = vector.extract %35[0, 0, 0] : f32 from vector<1x1x1xf32>
    %37 = vector.broadcast %36 : f32 to vector<1x1xf32>
    %38 = arith.addf %32, %37 : vector<1x1xf32>
    %c0_14 = arith.constant 0 : index
    %c0_15 = arith.constant 0 : index
    %39 = vector.load %arg6[%c0_14, %c0_15] : memref<1x1xf32, #tpu.memory_space<vmem>>, vector<1x1xf32>
    tpu.vector_store %arg6[%c0_14, %c0_15], %38 {strides = array<i32>} : memref<1x1xf32, #tpu.memory_space<vmem>>, vector<1x1xf32>,
    %c1_i32 = arith.constant 1 : i32
    %40 = arith.cmpi eq, %arg0, %c1_i32 : i32
    %41 = arith.extui %40 : i1 to i32
    %c0_i32_16 = arith.constant 0 : i32
    %42 = arith.cmpi ne, %41, %c0_i32_16 : i32
    scf.if %42 {
      %c0_17 = arith.constant 0 : index
      %c0_18 = arith.constant 0 : index
      %43 = vector.load %arg6[%c0_17, %c0_18] : memref<1x1xf32, #tpu.memory_space<vmem>>, vector<1x1xf32>
      %cst_19 = arith.constant 0.0833333358 : f32
      %44 = vector.broadcast %cst_19 : f32 to vector<1x1xf32>
      %45 = arith.mulf %43, %44 : vector<1x1xf32>
      %c0_20 = arith.constant 0 : index
      %c0_21 = arith.constant 0 : index
      %46 = vector.load %arg5[%c0_20, %c0_21] : memref<1x1xf32, #tpu.memory_space<vmem>>, vector<1x1xf32>
      tpu.vector_store %arg5[%c0_20, %c0_21], %45 {strides = array<i32>} : memref<1x1xf32, #tpu.memory_space<vmem>>, vector<1x1xf32>,
    } else {
    }
    return
  }
  func.func @transform_0(%arg0: i32) -> i32 {
    %c0_i32 = arith.constant 0 : i32
    %c0_i32_0 = arith.constant 0 : i32
    return %c0_i32 : i32
  }
  func.func @transform_1(%arg0: i32) -> (i32, i32) {
    %c0_i32 = arith.constant 0 : i32
    %c0_i32_0 = arith.constant 0 : i32
    return %arg0, %c0_i32 : i32, i32
  }
  func.func @transform_2(%arg0: i32) -> (i32, i32) {
    %c0_i32 = arith.constant 0 : i32
    %c0_i32_0 = arith.constant 0 : i32
    return %arg0, %c0_i32 : i32, i32
  }
  func.func @transform_3(%arg0: i32) -> (i32, i32) {
    %c0_i32 = arith.constant 0 : i32
    %c0_i32_0 = arith.constant 0 : i32
    return %arg0, %c0_i32 : i32, i32
  }
  func.func @transform_4(%arg0: i32) -> (i32, i32) {
    %c0_i32 = arith.constant 0 : i32
    %c0_i32_0 = arith.constant 0 : i32
    %c0_i32_1 = arith.constant 0 : i32
    return %c0_i32, %c0_i32_0 : i32, i32
  }
}

</mosaic_0001>

<bundles_post_ra>
// kernel: tpu_custom_call.1
= control target key start
LH: loop header
LB: loop body
LE: loop exit
PB: predicated region body
PF: predicated region fallthrough
CT: control target
= control target key end

     0   :  { %s687_s0 = inlined_call_operand.<no memory space> [shape: f32[1], index: 0, kind: input, shape index: {}]   ;;  %s688_s1 = inlined_call_operand.vmem [shape: f32[12,32], index: 1, kind: input, shape index: {}]   ;;  %s689_s2 = inlined_call_operand.hbm [shape: f32[12,32], index: 2, kind: input, shape index: {}]   ;;  %s690_s3 = inlined_call_operand.vmem [shape: f32[12,1], index: 3, kind: input, shape index: {}]   ;;  %s691_s4 = inlined_call_operand.hbm [shape: f32[1,1], index: 4, kind: output, shape index: {}]  }
   0x1   :  { %9 = sst [smem:[#allocation3]] %s687_s0 }
   0x2   :  { %10 = vsyncpa [#allocation5], 0 }
   0x3   :  { %12 = vsyncpa [#allocation5 + $0x1], 0 }
   0x4   :  { %13 = vsyncpa [#allocation6], 0  ;;  %s569_s17 = smov 0   ;;  %s571_s18 = smov 0  }
   0x5   :  { %s573_s19 = smov 0   ;;  %s575_s20 = smov 0  }
   0x6 LB: > { %s588_s0 = sadd.s32 4294967295, %s536_s20   ;;  %s591_s21 = sadd.s32 1, %s536_s20   ;;  %s536_s20 = sphi %s575_s20, %s701_s20   ;;  %s532_s19 = sphi %s573_s19, %s700_s19   ;;  %s528_s18 = sphi %s571_s18, %s699_s18   ;;  %s524_s17 = sphi %s569_s17, %s698_s17  }
   0x7   : > { %s70_s22 = ssub.s32 %s536_s20, %s591_s21  ;;  %s73_s23 = sadd.s32 1, %s532_s19 }
   0x8   : > { %p71_p0 = scmp.eq.s32.totalorder %s70_s22, 0  ;;  %p80_p1 = scmp.ne.s32.totalorder %s532_s19, %s528_s18 }
   0x9   : > { %p81_p2 = scmp.eq.s32.totalorder %s536_s20, 0  ;;  %p86_p3 = scmp.ne.s32.totalorder %s528_s18, %s524_s17 }
   0xa   : > { %s601_s24 = scalar_select %p71_p0, %s532_s19, %s73_s23  }
   0xb   : > { %p82_p4 = por %p81_p2, %p80_p1  ;;  %p87_p5 = scmp.eq.s32.totalorder %s588_s0, 0 }
   0xc   : > { %p407_p6 = scmp.lt.s32.totalorder %s536_s20, 2  ;;  %s167_s26 = sand.u32 1, %s532_s19  }
   0xd   : > { %p605_p7 = por %p87_p5, %p86_p3  ;;  %s382_s27 = sshll.u32 %s167_s26, 3 }
   0xe   : > { %s383_s28 = sshll.u32 %s536_s20, 7  ;;  %s171_s6 = scalar_lea.vmem [#allocation4], %s382_s27 }
   0xf   : > { %s693_s25 = scalar_select %p605_p7, 1, 0 }
  0x10   : > { %s614_s5 = scalar_lea.hbm %s689_s2, %s383_s28  ;;  %s178_s7 = sshll.u32 %s171_s6, 4  ;;  %s616_s7 = int_to_ptr.vmem [resolvable:$true] %s178_s7 }
  0x11   : > { %p618_p8 = pnand %p407_p6, %p82_p4  ;;  %s168_s9 = scalar_lea.sflag [#allocation5], %s167_s26 }
  0x12   : > { %s446_s10 = scalar_lea.hbm %s614_s5, 128  ;;  %s451_s13 = scalar_lea.hbm %s689_s2, 256 }
  0x13   : > { %p447_p11 = scmp.ne.s32.totalorder %s614_s5, %s446_s10  ;;  %p448_p12 = pneg %p618_p8 }
  0x14   : > { %p452_p1 = scmp.lt.s32.totalorder %s614_s5, %s689_s2  ;;  %p453_p2 = scmp.lt.s32.totalorder %s451_s13, %s446_s10 }
  0x15   : > { %p449_p13 = pnand %p448_p12, %p447_p11 }
  0x16   : > { %p454_p3 = por %p453_p2, %p452_p1 }
  0x17   : > { %p450_p0 = pneg %p449_p13 }
  0x19   : > { %p455_p4 = pnand %p454_p3, %p450_p0 }
  0x1b   : > { %458 = shalt.err (!%p455_p4)
}
  0x1c   : > { %s459_s16 = scalar_lea.vmem %s616_s7, 128  ;;  %s538_s17 = smov [#allocation4]  }
  0x1d   : > { %p460_p5 = scmp.ne.s32.totalorder %s616_s7, %s459_s16  ;;  %s464_s22 = sshll.u32 %s538_s17, 4  ;;  %s465_s22 = int_to_ptr.vmem [resolvable:$false] %s464_s22 }
  0x1e   : > { %s466_s23 = scalar_lea.vmem %s465_s22, 256  ;;  %p467_p13 = scmp.lt.s32.totalorder %s616_s7, %s465_s22 }
  0x1f   : > { %p462_p6 = pnand %p460_p5, %p448_p12  ;;  %p468_p9 = scmp.lt.s32.totalorder %s466_s23, %s459_s16 }
  0x21   : > { %p463_p11 = pneg %p462_p6  ;;  %p469_p10 = por %p468_p9, %p467_p13 }
  0x23   : > { %p470_p7 = pnand %p469_p10, %p463_p11 }
  0x25   : > { %473 = shalt.err (!%p470_p7)
}
  0x26   : > { %406 = dma.hbm_to_vmem [thread:$0]  (!%p618_p8), %s614_s5, 128, %s616_s7, %s168_s9  }
  0x27   : > { %p695_p0 = scmp.lt.s32.totalorder %s536_s20, 3  ;;  %p696_p1 = scmp.ge.s32.totalorder %s536_s20, 1 }
  0x29   : > { %p191_p12 = pnand %p696_p1, %p695_p0 }
  0x2a   : > { %s196_s26 = sand.u32 (!%p191_p12), 1, %s528_s18   ;;  %p697_p9 = scmp.ne.s32.totalorder (!%p191_p12), %s693_s25, 0 }
  0x2b   : > { %194 = sbr.rel (%p191_p12) target bundleno = 465 (0x1d1), region = 36  ;;  %s385_s27 = sshll.u32 (!%p191_p12), %s196_s26, 3 }
  0x2c   : > { %s197_s28 = scalar_lea.sflag (!%p191_p12), [#allocation5], %s196_s26  ;;  %s200_s29 = scalar_lea.vmem (!%p191_p12), [#allocation4], %s385_s27 }
  0x30   : > { %515 = dma.done.wait (%p697_p9), %s197_s28, 128  }
  0x31   : > { %517 = vsyncadd (%p697_p9), %s197_s28, 4294967168  ;;  %p228_p7 = scmp.lt.s32.totalorder %s588_s0, 1  ;;  %p388_p8 = scmp.ne.s32.totalorder %s588_s0, 0 }
  0x33   : > { %s229_s30 = scalar_select %p228_p7, %s588_s0, 1 }
  0x34   : > { %239 = sbr.rel (%p388_p8) target bundleno = 59 (0x3b), region = 44 }
  0x35   : > { %s386_s5 = sshll.u32 %s229_s30, 3 }
  0x36   : > { %s231_s7 = scalar_lea.vmem %s688_s1, %s386_s5  ;;  %s235_s10 = scalar_lea.vmem %s690_s3, %s386_s5 }
  0x39   : > { %vm240_vm0 = vcmask 0   ;;  %v539_v0 = vmov 0.0  }
  0x3a   : > { %241 = vst.msk [vmem:[#allocation2] sm:$0x1] %vm240_vm0, %v539_v0 }
  0x3b PF: > { %v242_v1 = vld [vmem:[%s231_s7] sm:$0xff]  ;;  %vm248_vm1 = vcmask 261120   ;;  %s259_s25 = sld [smem:[#allocation3]]  ;;  %v268_v9 = vlaneseq  ;;  %s389_s11 = sshll.u32 %s588_s0, 3  ;;  %vm276_vm5 = vcmask 7168   ;;  %vm289_vm6 = vcmask 0  }
  0x3c   : > { %v243_v2 = vld [vmem:[%s200_s29] sm:$0xff]  ;;  %v271_v18 = vstv %s389_s11  ;;  %p390_p10 = scmp.ne.s32.totalorder %s588_s0, 1 }
  0x3d   : > { %v245_v3 = vsub.f32 %v242_v1, %v243_v2  ;;  %v244_v14 = vld [vmem:[%s235_s10] sm:$0xff]  ;;  %v269_v16 = vshrl.u32 %v268_v9, 7 }
  0x3e   : > { %v263_v20 = vsub.f32 1.0, %v244_v14 }
  0x3f   : > { %v246_v4 = vadd.f32 1e-06, %v245_v3  ;;  %v272_v21 = vadd.s32 %v271_v18, %v269_v16 }
  0x41   : > { %v247_v5 = vmul.f32 %v246_v4, %v246_v4  ;;  %v260_v12 = vstv %s259_s25  ;;  %vm273_vm4 = vcmp.lt.s32.totalorder %v272_v21, 12  ;;  %v275_v35 = vld [vmem:[#allocation2] sm:$0x1] }
  0x43   : > { %v249_v6 = vsel %vm248_vm1, %v247_v5, 0.0 }
  0x44   : > { %250 = vadd.xlane.f32.xlu0 %v249_v6 }
  0xcd   : > { %v251_v7 = vpop.xlane.xlu0 %250 }
  0xce   : > { %444 = vrsqrt.f32 %v251_v7  ;;  %vm254_vm2 = vcmp.eq.f32.partialorder %v251_v7, inf  ;;  %v257_v11 = vand.u32 2147483648, %v251_v7  ;;  %vm256_vm3 = vcmp.eq.f32.partialorder %v251_v7, 0.0 }
  0xcf   : > { %v264_v23 = vmul.f32 %v263_v20, %v251_v7 }
  0xdb   : > { %v445_v8 = vpop.eup %444 }
  0xdc   : > { %v253_v10 = vmul.f32 %v445_v8, %v251_v7 }
  0xde   : > { %v255_v13 = vsel %vm254_vm2, %v251_v7, %v253_v10 }
  0xdf   : > { %v258_v15 = vsel %vm256_vm3, %v257_v11, %v255_v13 }
  0xe0   : > { %v261_v17 = vsub.f32 %v260_v12, %v258_v15 }
  0xe2   : > { %v262_v19 = vmax.f32 %v261_v17, 0.0 }
  0xe4   : > { %v265_v22 = vmul.f32 %v262_v19, %v262_v19 }
  0xe6   : > { %v266_v24 = vmul.f32 %v265_v22, %v244_v14 }
  0xe8   : > { %v267_v25 = vadd.f32 %v266_v24, %v264_v23 }
  0xea   : > { %v274_v26 = vsel %vm273_vm4, %v267_v25, 0.0 }
  0xeb   : > { %v277_v27 = vsel %vm276_vm5, %v274_v26, 0.0 }
  0xec   : > { %278 = vadd.xlane.f32.xlu0 %v277_v27 }
 0x175   : > { %v279_v28 = vpop.xlane.xlu0 %278 }
 0x176   : > { %v280_v29 = vrot.slane %v279_v28, 4 }
 0x178   : > { %v281_v30 = vadd.f32 %v280_v29, %v279_v28 }
 0x17a   : > { %v282_v31 = vrot.slane %v281_v30, 2 }
 0x17c   : > { %v283_v32 = vadd.f32 %v282_v31, %v281_v30 }
 0x17e   : > { %v284_v33 = vrot.slane %v283_v32, 1 }
 0x180   : > { %v285_v34 = vadd.f32 %v284_v33, %v283_v32 }
 0x182   : > { %395 = vpush %v285_v34 }
 0x1b3   : > { %s396_s12 = spop %395  ;;  %294 = sbr.rel (%p390_p10) target bundleno = 450 (0x1c2), region = 48 }
 0x1b4   : > { %v287_v36 = vstv %s396_s12 }
 0x1b5   : > { %v288_v37 = vadd.f32 %v287_v36, %v275_v35 }
 0x1b7   : > { %290 = vst.msk [vmem:[#allocation2] sm:$0x1] %vm289_vm6, %v288_v37 }
 0x1be   : > { %v295_v38 = vld [vmem:[#allocation2] sm:$0x1] }
 0x1bf   : > { %v296_v39 = vmul.f32 0.083333336, %v295_v38 }
 0x1c1   : > { %297 = vst.msk [vmem:[#allocation7] sm:$0x1] %vm289_vm6, %v296_v39 }
 0x1c2 PF: > { %p408_p2 = scmp.eq.s32.totalorder %s588_s0, 1  ;;  %s540_s13 = smov [#allocation7]  }
 0x1c3   : > { %s305_s14 = sshll.u32 %s540_s13, 4  ;;  %s306_s14 = int_to_ptr.vmem [resolvable:$true] %s305_s14 }
 0x1c4   : > { %s474_s15 = scalar_lea.vmem %s306_s14, 16  ;;  %s480_s16 = scalar_lea.vmem %s306_s14, 32 }
 0x1c5   : > { %p475_p3 = scmp.ne.s32.totalorder %s306_s14, %s474_s15  ;;  %p481_p6 = scmp.lt.s32.totalorder %s306_s14, %s306_s14 }
 0x1c6   : > { %p482_p11 = scmp.lt.s32.totalorder %s480_s16, %s474_s15 }
 0x1c7   : > { %p476_p4 = pnand %p475_p3, %p408_p2 }
 0x1c8   : > { %p483_p13 = por %p482_p11, %p481_p6 }
 0x1c9   : > { %p477_p5 = pneg %p476_p4 }
 0x1cb   : > { %p484_p0 = pnand %p483_p13, %p477_p5 }
 0x1cd   : > { %487 = shalt.err (!%p484_p0)
}
 0x1ce   : > { %400 = dma.vmem_to_hbm [thread:$0]  (%p408_p2), %s306_s14, 16, %s691_s4, [#allocation6]  }
 0x1cf   : > { %519 = dma.done.wait (%p408_p2), [#allocation6], 16  }
 0x1d0   : > { %521 = vsyncadd (%p408_p2), [#allocation6], 4294967280 }
 0x1d1 PF: > { %p16_p1 = scmp.ge.s32.totalorder %s591_s21, 4   ;;  %s698_s17 = smov %s528_s18 }
 0x1d2   : > { %s699_s18 = smov %s532_s19  ;;  %s700_s19 = smov %s601_s24 }
 0x1d3   : > { %s701_s20 = smov %s591_s21  ;;  %18 = sbr.rel (!%p16_p1) target bundleno = 6 (0x6), region = 87 }
 0x1d8   :  { %318 = vsyncpa [#allocation5], 1 }
 0x1d9   :  { %320 = vsyncpa [#allocation5 + $0x1], 1 }
 0x1da   :  { %321 = vsyncpa [#allocation6], 1 }
 0x1db   :  { %323 = vsyncpa [#allocation6 + $0x1], 1 }

</bundles_post_ra>
